<compile_context>
chip_gen: v5e
topology: v5e:2x2
jax: 0.10.0
libtpu: 0.0.40
codegen_flags: <defaults>
</compile_context>

<pallas_src>
import functools

import jax
import jax.numpy as jnp
from jax.experimental import pallas as pl
from jax.experimental.pallas import tpu as pltpu


_MAX_TM = 512     # rows per block: 512-row tiles sit near the HBM roofline
_MAX_TN = 1024    # output-feature strip per block
_MAX_TK = 1024    # reduction resident in one tile up to this size


def _round_up(v, m):
    return (v + m - 1) // m * m


def _vmem_budget_bytes():
    """~75% of this chip's per-core VMEM (safe fallback: 48 MiB)."""
    try:
        cap = int(pltpu.get_tpu_info().vmem_capacity_bytes)
    except Exception:
        cap = 64 << 20
    return (cap * 3) // 4


# ---------------------------------------------------------------------------
# Kernels
# ---------------------------------------------------------------------------
def _linear_kernel(x_ref, w_ref, b_ref, o_ref, *, compute_dtype):
    """Single-K-tile path: one MXU matmul per (M, N) block, bias fused."""
    x = x_ref[...]
    w = w_ref[...]
    if compute_dtype is not None:
        # Cast in-kernel so the wrapper never materializes a casted copy of x.
        x = x.astype(compute_dtype)
        w = w.astype(compute_dtype)
    acc = jnp.dot(x, w, preferred_element_type=jnp.float32)
    o_ref[...] = (acc + b_ref[...]).astype(o_ref.dtype)


def _linear_kernel_ktiled(x_ref, w_ref, b_ref, o_ref, acc_ref, *,
                          compute_dtype):
    """Fallback for very large in_features: K tiled, f32 accumulator."""
    k = pl.program_id(2)

    @pl.when(k == 0)
    def _():
        acc_ref[...] = jnp.zeros_like(acc_ref)

    x = x_ref[...]
    w = w_ref[...]
    if compute_dtype is not None:
        x = x.astype(compute_dtype)
        w = w.astype(compute_dtype)
    acc_ref[...] += jnp.dot(x, w, preferred_element_type=jnp.float32)

    @pl.when(k == pl.num_programs(2) - 1)
    def _():
        o_ref[...] = (acc_ref[...] + b_ref[...]).astype(o_ref.dtype)


# ---------------------------------------------------------------------------
# Wrapper
# ---------------------------------------------------------------------------
def _linear_pallas(x2d, weight, bias, *, compute_dtype=None):
    """y = x2d @ weight + bias with f32 accumulation on the MXU."""
    M, K = x2d.shape
    Kw, N = weight.shape
    assert K == Kw, (K, Kw)
    out_dtype = x2d.dtype

    x_item = jnp.dtype(x2d.dtype).itemsize
    w_item = jnp.dtype(weight.dtype).itemsize
    o_item = jnp.dtype(out_dtype).itemsize
    m_sub = 16 if x_item == 2 else 8   # bf16 packs 2 rows per sublane

    # ---- M tile: biggest tile, never pad/copy x over M; keep >=2 parallel
    # blocks (v7x megacore) when the problem is big enough to split.
    if M <= _MAX_TM:
        tm = M                                   # full-extent block
        if M >= 256:
            tm = _round_up(-(-M // 2), m_sub)    # 2 blocks, both TCs busy
    else:
        tm = _MAX_TM
    gm = pl.cdiv(M, tm)

    # ---- N tile: whole output strip when it fits -> x read exactly once.
    tn = N if N <= _MAX_TN else _MAX_TN
    gn = pl.cdiv(N, tn)

    b2d = bias.reshape(1, N).astype(jnp.float32)

    cost = pl.CostEstimate(
        flops=2 * M * K * N,
        transcendentals=0,
        bytes_accessed=M * K * x_item + K * N * w_item + M * N * o_item + N * 4,
    )

    if K <= _MAX_TK:
        # ---------------- common path: K resident, 2-D (M, N) grid ----------
        tk = K  # full-extent along K: no padding of x needed at all
        vmem_est = (2 * tm * tk * x_item          # x tiles (double-buffered)
                    + 2 * tk * tn * w_item        # weight strip
                    + 2 * tn * 4                  # bias row
                    + 2 * tm * tn * o_item)       # output tiles
        vmem_limit = min(max(2 * vmem_est + (4 << 20), 16 << 20),
                         _vmem_budget_bytes())

        return pl.pallas_call(
            functools.partial(_linear_kernel, compute_dtype=compute_dtype),
            out_shape=jax.ShapeDtypeStruct((M, N), out_dtype),
            grid_spec=pltpu.PrefetchScalarGridSpec(
                num_scalar_prefetch=0,
                grid=(gm, gn),
                in_specs=[
                    pl.BlockSpec((tm, tk), lambda i, j: (i, 0)),   # x: once per i
                    pl.BlockSpec((tk, tn), lambda i, j: (0, j)),   # weight strip
                    pl.BlockSpec((1, tn), lambda i, j: (0, j)),    # bias row
                ],
                out_specs=pl.BlockSpec((tm, tn), lambda i, j: (i, j)),
            ),
            compiler_params=pltpu.CompilerParams(
                dimension_semantics=("parallel", "parallel"),
                vmem_limit_bytes=vmem_limit,
            ),
            cost_estimate=cost,
        )(x2d, weight, b2d)

    # ---------------- fallback: very large K, tile the reduction ------------
    tk = _MAX_TK
    K_pad = _round_up(K, tk)
    # K must be zero-padded (garbage K columns would corrupt valid rows).
    x_p = jnp.pad(x2d, ((0, 0), (0, K_pad - K))) if K_pad != K else x2d
    w_p = jnp.pad(weight, ((0, K_pad - K), (0, 0))) if K_pad != K else weight
    gk = K_pad // tk

    vmem_est = (2 * tm * tk * x_item
                + 2 * tk * tn * w_item
                + 2 * tn * 4
                + 2 * tm * tn * o_item
                + tm * tn * 4)                    # f32 accumulator scratch
    vmem_limit = min(max(2 * vmem_est + (4 << 20), 16 << 20),
                     _vmem_budget_bytes())

    return pl.pallas_call(
        functools.partial(_linear_kernel_ktiled, compute_dtype=compute_dtype),
        out_shape=jax.ShapeDtypeStruct((M, N), out_dtype),
        grid_spec=pltpu.PrefetchScalarGridSpec(
            num_scalar_prefetch=0,
            grid=(gm, gn, gk),
            in_specs=[
                pl.BlockSpec((tm, tk), lambda i, j, k: (i, k)),
                pl.BlockSpec((tk, tn), lambda i, j, k: (k, j)),
                pl.BlockSpec((1, tn), lambda i, j, k: (0, j)),
            ],
            out_specs=pl.BlockSpec((tm, tn), lambda i, j, k: (i, j)),
            scratch_shapes=[pltpu.VMEM((tm, tn), jnp.float32)],
        ),
        compiler_params=pltpu.CompilerParams(
            dimension_semantics=("parallel", "parallel", "arbitrary"),
            vmem_limit_bytes=vmem_limit,
        ),
        cost_estimate=cost,
    )(x_p, w_p, b2d)


def time_distributed_linear(x, weight, bias, *, batch_first=False,
                            compute_dtype=None):
    """Pallas implementation of TimeDistributed(nn.Linear)(x).

    x:      (d0, d1, ..., in_features)
    weight: (in_features, out_features)   (transposed vs. torch's (out, in))
    bias:   (out_features,)
    """
    out_f = weight.shape[1]

    if x.ndim <= 2:
        # Degenerate TimeDistributed case: apply the module directly.
        x2 = x if x.ndim == 2 else x[None, :]
        y2 = _linear_pallas(x2, weight, bias, compute_dtype=compute_dtype)
        return y2 if x.ndim == 2 else y2[0]

    orig_shape = x.shape
    in_f = orig_shape[-1]
    x_flat = x.reshape(-1, in_f)
    y_flat = _linear_pallas(x_flat, weight, bias, compute_dtype=compute_dtype)
    if batch_first:
        return y_flat.reshape(orig_shape[0], -1, out_f)
    return y_flat.reshape(-1, orig_shape[1], out_f)


if __name__ == "__main__":
    key = jax.random.PRNGKey(0)
    k_x, k_w, k_b = jax.random.split(key, 3)

    seq, batch, in_features, out_features = 8, 2, 32, 32

    # Input: (seq, batch, in_features)  -- batch_first=False convention.
    x = jax.random.normal(k_x, (seq, batch, in_features), dtype=jnp.float32)

    # "nn.Linear"-shaped parameters (weight stored as (in, out)).
    weight = jax.random.normal(
        k_w, (in_features, out_features), dtype=jnp.float32) * 0.1
    bias = jax.random.normal(k_b, (out_features,), dtype=jnp.float32) * 0.1

    # f32 path (tight tolerance).
    y = jax.block_until_ready(
        time_distributed_linear(x, weight, bias, batch_first=False))
    y_ref = (x.reshape(-1, in_features) @ weight + bias).reshape(
        -1, batch, out_features)
    assert y.shape == (seq, batch, out_features), y.shape
    assert jnp.allclose(y, y_ref, atol=1e-5, rtol=1e-5)

    # Non-tile-multiple row count + batch_first=True branch.
    x_odd = jax.random.normal(k_x, (5, 3, in_features), dtype=jnp.float32)
    y_odd = jax.block_until_ready(
        time_distributed_linear(x_odd, weight, bias, batch_first=True))
    y_odd_ref = (x_odd.reshape(-1, in_features) @ weight + bias).reshape(
        5, -1, out_features)
    assert jnp.allclose(y_odd, y_odd_ref, atol=1e-5, rtol=1e-5)

    # bf16-operand MXU path (fast path on v6e/v7x): f32 accumulation,
    # looser tolerance is expected for bf16 operands.
    y_bf16 = jax.block_until_ready(
        time_distributed_linear(x, weight, bias, compute_dtype=jnp.bfloat16))
    assert jnp.allclose(y_bf16, y_ref, atol=5e-2, rtol=5e-2)

    print("KERNEL_OK")
</pallas_src>

<mosaic_0001>
module attributes {stable_mosaic.version = 11 : i64} {
  func.func @_linear_kernel(%arg0: i32, %arg1: i32, %arg2: memref<16x32xf32, #tpu.memory_space<vmem>>, %arg3: memref<32x32xf32, #tpu.memory_space<vmem>>, %arg4: memref<1x32xf32, #tpu.memory_space<vmem>>, %arg5: memref<16x32xf32, #tpu.memory_space<vmem>>) attributes {dimension_semantics = [#tpu.dimension_semantics<parallel>, #tpu.dimension_semantics<parallel>], iteration_bounds = array<i64: 1, 1>, scalar_prefetch = 0 : i64, scratch_operands = 0 : i64, tpu.core_type = #tpu.core_type<tc>, window_params = [{transform_indices = @transform_0, window_bounds = array<i64: 16, 32>}, {transform_indices = @transform_1, window_bounds = array<i64: 32, 32>}, {transform_indices = @transform_2, window_bounds = array<i64: 1, 32>}, {transform_indices = @transform_3, window_bounds = array<i64: 16, 32>}]} {
    %c0 = arith.constant 0 : index
    %c0_0 = arith.constant 0 : index
    %0 = vector.load %arg2[%c0, %c0_0] : memref<16x32xf32, #tpu.memory_space<vmem>>, vector<16x32xf32>
    %c0_1 = arith.constant 0 : index
    %c0_2 = arith.constant 0 : index
    %1 = vector.load %arg3[%c0_1, %c0_2] : memref<32x32xf32, #tpu.memory_space<vmem>>, vector<32x32xf32>
    %cst = arith.constant dense<0.000000e+00> : vector<16x32xf32>
    %2 = tpu.matmul %0, %1, %cst {dimension_numbers = #tpu.dot_dimension_numbers<[1], [0], [0], [1], [0, 0, 1, 1], [], []>} : vector<16x32xf32>, vector<32x32xf32>, vector<16x32xf32> -> vector<16x32xf32>
    %c0_3 = arith.constant 0 : index
    %c0_4 = arith.constant 0 : index
    %3 = vector.load %arg4[%c0_3, %c0_4] : memref<1x32xf32, #tpu.memory_space<vmem>>, vector<1x32xf32>
    %4 = vector.broadcast %3 : vector<1x32xf32> to vector<16x32xf32>
    %5 = arith.addf %2, %4 : vector<16x32xf32>
    %c0_5 = arith.constant 0 : index
    %c0_6 = arith.constant 0 : index
    %6 = vector.load %arg5[%c0_5, %c0_6] : memref<16x32xf32, #tpu.memory_space<vmem>>, vector<16x32xf32>
    tpu.vector_store %arg5[%c0_5, %c0_6], %5 {strides = array<i32>} : memref<16x32xf32, #tpu.memory_space<vmem>>, vector<16x32xf32>,
    return
  }
  func.func @transform_0(%arg0: i32, %arg1: i32) -> (i32, i32) {
    %c0_i32 = arith.constant 0 : i32
    %c0_i32_0 = arith.constant 0 : i32
    return %arg0, %c0_i32 : i32, i32
  }
  func.func @transform_1(%arg0: i32, %arg1: i32) -> (i32, i32) {
    %c0_i32 = arith.constant 0 : i32
    %c0_i32_0 = arith.constant 0 : i32
    return %c0_i32, %arg1 : i32, i32
  }
  func.func @transform_2(%arg0: i32, %arg1: i32) -> (i32, i32) {
    %c0_i32 = arith.constant 0 : i32
    %c0_i32_0 = arith.constant 0 : i32
    return %c0_i32, %arg1 : i32, i32
  }
  func.func @transform_3(%arg0: i32, %arg1: i32) -> (i32, i32) {
    %c0_i32 = arith.constant 0 : i32
    return %arg0, %arg1 : i32, i32
  }
}

</mosaic_0001>

<bundles_post_ra>
// kernel: tpu_custom_call.1
= control target key start
LH: loop header
LB: loop body
LE: loop exit
PB: predicated region body
PF: predicated region fallthrough
CT: control target
= control target key end

     0   :  { %8 = vsyncpa [#allocation3], 0  ;;  %s249_s0 = inlined_call_operand.hbm [shape: f32[16,32], index: 0, kind: input, shape index: {}]   ;;  %s250_s1 = inlined_call_operand.hbm [shape: f32[32,32], index: 1, kind: input, shape index: {}]   ;;  %s251_s2 = inlined_call_operand.vmem [shape: f32[1,32], index: 2, kind: input, shape index: {}]   ;;  %s252_s3 = inlined_call_operand.hbm [shape: f32[16,32], index: 3, kind: output, shape index: {}]  }
   0x1   :  { %9 = vsyncpa [#allocation6], 0 }
   0x2   :  { %10 = vsyncpa [#allocation4], 0  ;;  %s15_s14 = sshll.u32 %s249_s0, 4  ;;  %s199_s15 = smov [#allocation2]   ;;  %s16_s14 = int_to_ptr.hbm [resolvable:$true] %s15_s14 }
   0x3   :  { %s17_s16 = sshll.u32 %s199_s15, 4  ;;  %s28_s19 = sshll.u32 %s250_s1, 4  ;;  %s18_s16 = int_to_ptr.vmem [resolvable:$true] %s17_s16  ;;  %s29_s19 = int_to_ptr.hbm [resolvable:$true] %s28_s19 }
   0x4   :  { %s200_s20 = smov 128   ;;  %s201_s21 = smov 8  }
   0x5   :  { %23 = dma.hbm_to_vmem [thread:$0]  %s16_s14, 256, %s18_s16, [#allocation3], %s200_s20, %s200_s20, %s201_s21  }
   0x6   :  { %s202_s22 = smov [#allocation5]  }
   0x7   :  { %s30_s23 = sshll.u32 %s202_s22, 4  ;;  %s31_s23 = int_to_ptr.vmem [resolvable:$true] %s30_s23 }
   0x8   :  { %36 = dma.hbm_to_vmem [thread:$0]  %s29_s19, 512, %s31_s23, [#allocation6], %s200_s20, %s200_s20, %s201_s21  }
   0x9   :  { %193 = dma.done.wait [#allocation3], 256  }
   0xa   :  { %194 = vsyncadd [#allocation3], 4294967040 }
   0xb   :  { %195 = dma.done.wait [#allocation6], 512  }
   0xc   :  { %196 = vsyncadd [#allocation6], 4294966784  ;;  %v52_v0 = vld [vmem:[#allocation5 + $0x18] sm:$0xff]  ;;  %v51_v1 = vld [vmem:[#allocation5 + $0x10] sm:$0xff]  ;;  %vm57_vm0 = vcmask 261120   ;;  %s203_s24 = smov [#allocation7]  }
   0xd   :  { %76 = vmatpush.msra.mxu0 %v52_v0  ;;  %111 = vmatpush.msra.mxu1 %v52_v0  ;;  %v50_v2 = vld [vmem:[#allocation5 + $0x8] sm:$0xff]  ;;  %v49_v3 = vld [vmem:[#allocation5] sm:$0xff]  ;;  %v47_v4 = vld [vmem:[#allocation2] sm:$0xff]  ;;  %s93_s25 = sshll.u32 %s203_s24, 4  ;;  %s95_s28 = sshll.u32 %s252_s3, 4  ;;  %s94_s25 = int_to_ptr.vmem [resolvable:$true] %s93_s25  ;;  %s96_s28 = int_to_ptr.hbm [resolvable:$true] %s95_s28 }
   0xe   :  { %v48_v5 = vld [vmem:[#allocation2 + $0x8] sm:$0xff]  ;;  %v120_v6 = vld [vmem:[%s251_s2] ss:$0 sm:$0xff] }
   0xf   :  { %77 = vmatpush.msra.mxu0 %v51_v1  ;;  %112 = vmatpush.msra.mxu1 %v51_v1 }
  0x11   :  { %78 = vmatpush.msra.mxu0 %v50_v2  ;;  %113 = vmatpush.msra.mxu1 %v50_v2 }
  0x13   :  { %79 = vmatpush.msra.mxu0 %v49_v3  ;;  %114 = vmatpush.msra.mxu1 %v49_v3 }
  0x14   :  { %109 = vmatmul.msk.f32.vlgmr.msra.gmra.mxu0 %vm57_vm0, %v47_v4  ;;  %110 = vmatmul.msk.f32.vlgmr.msra.gmra.mxu1 %vm57_vm0, %v48_v5 }
  0x91   :  { %v81_v7 = vpop.f32.mrf.mxu0  ;;  %v84_v8 = vpop.f32.mrf.mxu1 }
  0x92   :  { %v82_v9 = vadd.f32 %v120_v6, %v81_v7  ;;  %v85_v10 = vadd.f32 %v120_v6, %v84_v8 }
  0x94   :  { %87 = vst.msk [vmem:[#allocation7] sm:$0xff] %vm57_vm0, %v82_v9 }
  0x95   :  { %88 = vst.msk [vmem:[#allocation7 + $0x8] sm:$0xff] %vm57_vm0, %v85_v10 }
  0x96   :  { %101 = dma.vmem_to_hbm [thread:$0]  %s94_s25, 256, %s96_s28, [#allocation4], %s200_s20, %s200_s20, %s201_s21  }
  0x97   :  { %197 = dma.done.wait [#allocation4], 256  }
  0x98   :  { %198 = vsyncadd [#allocation4], 4294967040 }
  0x99   :  { %106 = vsyncpa [#allocation3], 1 }
  0x9a   :  { %107 = vsyncpa [#allocation6], 1 }
  0x9b   :  { %108 = vsyncpa [#allocation4], 1 }

</bundles_post_ra>
